<compile_context>
chip_gen: v7x
topology: tpu7x:2x2x1
jax: 0.10.0
libtpu: 0.0.40
codegen_flags: <defaults>
</compile_context>

<pallas_src>
import jax
import jax.numpy as jnp
from jax import lax
from jax.experimental import pallas as pl
from jax.experimental.pallas import tpu as pltpu

LANES = 128
SUBLANES = 8
CHUNK_CANDIDATES = (64, 32, 16, 8)     # rows per inner step / accumulator rows
MAX_TILE_M = 16384                     # (16384, 128) f32 block = 8 MiB per input
VMEM_LIMIT_BYTES = 48 * 1024 * 1024    # 2 in x 2 bufs x 8 MiB = 32 MiB + headroom


def _round_up(a: int, b: int) -> int:
    return (a + b - 1) // b * b


def _num_tensorcores() -> int:
    """Best-effort TensorCore count per device (2 on v4/v5p/v7x, else 1).

    Defaulting to 1 is always correct; the 2-way split only helps chips whose
    single JAX device fronts two TensorCores ("parallel" grid dims are
    core-sharded there).  A pltpu.CORE_PARALLEL / get_tpu_info based derivation
    could replace this heuristic once verified on v7x.
    """
    try:
        kind = jax.devices()[0].device_kind.lower()
    except Exception:
        return 1
    return 2 if any(t in kind for t in ("v4", "v5p", "7x", "v7")) else 1


def _make_loss_kernel(tile_m: int, chunk: int, m_rows: int,
                      blocks_per_split: int, nb_total: int,
                      needs_mask: bool, edge_thresh: int):
    n_full = tile_m // chunk
    unroll = min(8, n_full)

    def loss_kernel(x_ref, y_ref, o_ref, acc_ref):
        c = pl.program_id(0)          # core-split index ("parallel")
        i = pl.program_id(1)          # block index within split (reduction axis)
        gblock = c * blocks_per_split + i   # UNclamped global block id (for masking)

        @pl.when(i == 0)
        def _():
            acc_ref[...] = jnp.zeros_like(acc_ref)

        def accumulate(masked: bool):
            base = gblock * tile_m

            def body(j, vacc):
                start = pl.multiple_of(j * chunk, chunk)
                xc = x_ref[pl.ds(start, chunk), :].astype(jnp.float32)
                yc = y_ref[pl.ds(start, chunk), :].astype(jnp.float32)
                d = xc - yc
                if masked:
                    # Mask rows past the end of the (m_rows, 128) slab BEFORE
                    # squaring, so garbage (possibly inf/nan) in the partial-block
                    # DMA overhang or in clamped duplicate blocks never reaches
                    # the sum.
                    rows = (lax.broadcasted_iota(jnp.int32, (chunk, 1), 0)
                            + base + start)
                    d = jnp.where(rows < m_rows, d, jnp.float32(0.0))
                # (|d|*100)^2 == 1e4 * d*d ; scale applied once outside the kernel.
                return vacc + d * d

            vacc = lax.fori_loop(0, n_full, body,
                                 jnp.zeros((chunk, LANES), jnp.float32),
                                 unroll=unroll)
            acc_ref[...] += vacc

        if needs_mask:
            is_edge = gblock >= edge_thresh
            @pl.when(is_edge)
            def _():
                accumulate(True)
            @pl.when(jnp.logical_not(is_edge))
            def _():
                accumulate(False)
        else:
            accumulate(False)

        @pl.when(i == pl.num_programs(1) - 1)
        def _():
            # Single cross-lane/sublane reduction per core, once per call.
            o_ref[0, 0] = jnp.sum(acc_ref[...])

    return loss_kernel


def my_loss(x, y, *, max_tile_m: int = MAX_TILE_M, force_splits: int | None = None):
    """mean((|x - y| * 100)^2), computed with a Pallas TPU kernel."""
    assert x.shape == y.shape, "x and y must have the same shape"
    n_elems = int(x.size)
    if n_elems == 0:
        # torch.mean of an empty tensor is NaN; avoid a divide-by-zero.
        return jnp.float32(float("nan"))

    xf = jnp.ravel(x)
    yf = jnp.ravel(y)

    rem = n_elems % LANES
    if rem:
        # Zero-pad BOTH inputs: padded elements give d = 0 and contribute nothing,
        # so no lane mask is needed in-kernel.  (See TODO(synk) above re: the copy.)
        pad = LANES - rem
        xf = jnp.pad(xf, (0, pad))
        yf = jnp.pad(yf, (0, pad))

    m_rows = xf.size // LANES
    x2 = xf.reshape(m_rows, LANES)
    y2 = yf.reshape(m_rows, LANES)

    # Tile rows: large inputs get the full MAX tile; small inputs get a single
    # (near-)full-dim block.
    if m_rows >= max_tile_m:
        tile_m = max_tile_m
    else:
        tile_m = _round_up(m_rows, SUBLANES)
    chunk = next(c for c in CHUNK_CANDIDATES if tile_m % c == 0)

    nb_total = pl.cdiv(m_rows, tile_m)
    splits = force_splits if force_splits is not None else _num_tensorcores()
    if nb_total < 2:
        splits = 1
    blocks_per_split = pl.cdiv(nb_total, splits)

    # Mask needed iff the (splits x blocks_per_split) tiling over-covers the slab
    # (partial last block and/or duplicated clamped blocks).
    needs_mask = (splits * blocks_per_split * tile_m != m_rows)
    last_partial = (m_rows % tile_m != 0)
    edge_thresh = nb_total - 1 if last_partial else nb_total

    if splits * blocks_per_split == nb_total:
        def in_map(c, i):
            return (c * blocks_per_split + i, 0)
    else:
        def in_map(c, i):
            # Clamp so we never request a block starting past the array end; the
            # in-kernel row mask zeroes any duplicated blocks' contribution.
            return (jnp.minimum(c * blocks_per_split + i, nb_total - 1), 0)

    kernel = _make_loss_kernel(tile_m, chunk, m_rows, blocks_per_split,
                               nb_total, needs_mask, edge_thresh)

    partials = pl.pallas_call(
        kernel,
        out_shape=jax.ShapeDtypeStruct((splits, 1), jnp.float32),
        grid_spec=pltpu.PrefetchScalarGridSpec(
            num_scalar_prefetch=0,
            grid=(splits, blocks_per_split),
            in_specs=[
                pl.BlockSpec((tile_m, LANES), in_map),
                pl.BlockSpec((tile_m, LANES), in_map),
            ],
            out_specs=pl.BlockSpec(
                (1, 1), lambda c, i: (c, 0), memory_space=pltpu.SMEM),
            scratch_shapes=[pltpu.VMEM((chunk, LANES), jnp.float32)],
        ),
        compiler_params=pltpu.CompilerParams(
            dimension_semantics=("parallel", "arbitrary"),
            vmem_limit_bytes=VMEM_LIMIT_BYTES,
        ),
    )(x2, y2)

    # Fold the (100)^2 scale and the mean divisor into a single final multiply.
    return jnp.sum(partials) * jnp.float32(1e4 / n_elems)


if __name__ == "__main__":
    key = jax.random.PRNGKey(0)

    # (shape, kwargs) — primary small NCHW demo plus small shapes that exercise the
    # chunked loop, the ragged zero-pad path, and the multi-block / masked-edge /
    # 2-way-split path (forced small tiles so the data stays tiny).
    cases = [
        ((2, 4, 16, 16), {}),                                    # aligned, 1 block
        ((4, 8, 32, 96), {}),                                    # chunk loop (12 steps)
        ((10, 100), {}),                                         # ragged n -> pad path
        ((16, 40, 128), dict(max_tile_m=256, force_splits=2)),   # multi-block + mask + split
    ]

    for shape, kw in cases:
        key, kx, ky = jax.random.split(key, 3)
        x = jax.random.normal(kx, shape, dtype=jnp.float32)
        y = jax.random.normal(ky, shape, dtype=jnp.float32)

        loss = my_loss(x, y, **kw)
        jax.block_until_ready(loss)

        # Reference check in plain JAX (same math as the PyTorch module).
        ref = jnp.mean((jnp.abs(x - y) * 100.0) ** 2)
        assert jnp.allclose(loss, ref, rtol=1e-4, atol=1e-2), (shape, loss, ref)

    print("KERNEL_OK")
</pallas_src>

<mosaic_0001>
module attributes {stable_mosaic.version = 11 : i64} {
  func.func @loss_kernel(%arg0: i32, %arg1: i32, %arg2: memref<16x128xf32, #tpu.memory_space<vmem>>, %arg3: memref<16x128xf32, #tpu.memory_space<vmem>>, %arg4: memref<1x1xf32, #tpu.memory_space<smem>>, %arg5: memref<16x128xf32, #tpu.memory_space<vmem>>) attributes {dimension_semantics = [#tpu.dimension_semantics<parallel>, #tpu.dimension_semantics<arbitrary>], iteration_bounds = array<i64: 1, 1>, scalar_prefetch = 0 : i64, scratch_operands = 1 : i64, tpu.core_type = #tpu.core_type<tc>, window_params = [{transform_indices = @transform_0, window_bounds = array<i64: 16, 128>}, {transform_indices = @transform_1, window_bounds = array<i64: 16, 128>}, {transform_indices = @transform_2, window_bounds = array<i64: 1, 1>}]} {
    %c0_i32 = arith.constant 0 : i32
    %0 = arith.cmpi eq, %arg1, %c0_i32 : i32
    %1 = arith.extui %0 : i1 to i32
    %c0_i32_0 = arith.constant 0 : i32
    %2 = arith.cmpi ne, %1, %c0_i32_0 : i32
    scf.if %2 {
      %cst_9 = arith.constant 0.000000e+00 : f32
      %19 = vector.broadcast %cst_9 : f32 to vector<16x128xf32>
      %c0_10 = arith.constant 0 : index
      %c0_11 = arith.constant 0 : index
      %20 = vector.load %arg5[%c0_10, %c0_11] : memref<16x128xf32, #tpu.memory_space<vmem>>, vector<16x128xf32>
      tpu.vector_store %arg5[%c0_10, %c0_11], %19 {strides = array<i32>} : memref<16x128xf32, #tpu.memory_space<vmem>>, vector<16x128xf32>,
    } else {
    }
    %cst = arith.constant 0.000000e+00 : f32
    %3 = vector.broadcast %cst : f32 to vector<16x128xf32>
    %c0_i32_1 = arith.constant 0 : i32
    %c16_i32 = arith.constant 16 : i32
    %4 = arith.muli %c0_i32_1, %c16_i32 : i32
    %5 = tpu.assume_multiple %4, 16 : i32
    %6 = arith.index_cast %5 : i32 to index
    %c0 = arith.constant 0 : index
    %7 = vector.load %arg2[%6, %c0] : memref<16x128xf32, #tpu.memory_space<vmem>>, vector<16x128xf32>
    %8 = arith.index_cast %5 : i32 to index
    %c0_2 = arith.constant 0 : index
    %9 = vector.load %arg3[%8, %c0_2] : memref<16x128xf32, #tpu.memory_space<vmem>>, vector<16x128xf32>
    %10 = arith.subf %7, %9 : vector<16x128xf32>
    %11 = arith.mulf %10, %10 : vector<16x128xf32>
    %12 = arith.addf %3, %11 : vector<16x128xf32>
    %c1_i32 = arith.constant 1 : i32
    %c0_3 = arith.constant 0 : index
    %c0_4 = arith.constant 0 : index
    %13 = vector.load %arg5[%c0_3, %c0_4] : memref<16x128xf32, #tpu.memory_space<vmem>>, vector<16x128xf32>
    %14 = arith.addf %13, %12 : vector<16x128xf32>
    %c0_5 = arith.constant 0 : index
    %c0_6 = arith.constant 0 : index
    %15 = vector.load %arg5[%c0_5, %c0_6] : memref<16x128xf32, #tpu.memory_space<vmem>>, vector<16x128xf32>
    tpu.vector_store %arg5[%c0_5, %c0_6], %14 {strides = array<i32>} : memref<16x128xf32, #tpu.memory_space<vmem>>, vector<16x128xf32>,
    %c0_i32_7 = arith.constant 0 : i32
    %16 = arith.cmpi eq, %arg1, %c0_i32_7 : i32
    %17 = arith.extui %16 : i1 to i32
    %c0_i32_8 = arith.constant 0 : i32
    %18 = arith.cmpi ne, %17, %c0_i32_8 : i32
    scf.if %18 {
      %c0_9 = arith.constant 0 : index
      %c0_10 = arith.constant 0 : index
      %19 = vector.load %arg5[%c0_9, %c0_10] : memref<16x128xf32, #tpu.memory_space<vmem>>, vector<16x128xf32>
      %20 = vector.shape_cast %19 : vector<16x128xf32> to vector<1x16x128xf32>
      %cst_11 = arith.constant dense<0.000000e+00> : vector<1xf32>
      %21 = vector.multi_reduction <add>, %20, %cst_11 [1, 2] : vector<1x16x128xf32> to vector<1xf32>
      %22 = vector.shape_cast %21 : vector<1xf32> to vector<1x1x1xf32>
      %23 = vector.extract %22[0, 0, 0] : f32 from vector<1x1x1xf32>
      %c0_12 = arith.constant 0 : index
      %c0_13 = arith.constant 0 : index
      %24 = memref.load %arg4[%c0_12, %c0_13] : memref<1x1xf32, #tpu.memory_space<smem>>
      memref.store %23, %arg4[%c0_12, %c0_13] : memref<1x1xf32, #tpu.memory_space<smem>>
    } else {
    }
    return
  }
  func.func @transform_0(%arg0: i32, %arg1: i32) -> (i32, i32) {
    %c1_i32 = arith.constant 1 : i32
    %0 = arith.muli %arg0, %c1_i32 : i32
    %1 = arith.addi %0, %arg1 : i32
    %c0_i32 = arith.constant 0 : i32
    %c0_i32_0 = arith.constant 0 : i32
    return %1, %c0_i32 : i32, i32
  }
  func.func @transform_1(%arg0: i32, %arg1: i32) -> (i32, i32) {
    %c1_i32 = arith.constant 1 : i32
    %0 = arith.muli %arg0, %c1_i32 : i32
    %1 = arith.addi %0, %arg1 : i32
    %c0_i32 = arith.constant 0 : i32
    %c0_i32_0 = arith.constant 0 : i32
    return %1, %c0_i32 : i32, i32
  }
  func.func @transform_2(%arg0: i32, %arg1: i32) -> (i32, i32) {
    %c0_i32 = arith.constant 0 : i32
    %c0_i32_0 = arith.constant 0 : i32
    return %arg0, %c0_i32 : i32, i32
  }
}

</mosaic_0001>

<bundles_post_ra>
// kernel: tpu_custom_call.1
= control target key start
LH: loop header
LB: loop body
LE: loop exit
PB: predicated region body
PF: predicated region fallthrough
CT: control target
= control target key end

     0   :  { %7 = vsyncpa [#allocation4], 0  ;;  %s229_s0 = inlined_call_operand.hbm [shape: f32[16,128], index: 0, kind: input, shape index: {}]   ;;  %s230_s1 = inlined_call_operand.hbm [shape: f32[16,128], index: 1, kind: input, shape index: {}]   ;;  %s231_s2 = inlined_call_operand.hbm [shape: f32[1,1], index: 2, kind: output, shape index: {}]  }
   0x1   :  { %8 = vsyncpa [#allocation7], 0 }
   0x2   :  { %9 = vsyncpa [#allocation5], 0  ;;  %s173_s9 = smov [#allocation3]   ;;  %s113_s13 = scalar_lea.hbm %s229_s0, 256 }
   0x3   :  { %s19_s10 = sshll.u32 %s173_s9, 4  ;;  %p114_p0 = scmp.ne.s32.totalorder %s229_s0, %s113_s13  ;;  %s20_s10 = int_to_ptr.vmem [resolvable:$true] %s19_s10 }
   0x4   :  { %p117_p1 = scmp.lt.u32.totalorder %s113_s13, %s229_s0 }
   0x6   :  { %p119_p2 = pnand %p117_p1, %p114_p0 }
   0x8   :  { %122 = shalt.err (!%p119_p2)
}
   0x9   :  { %s123_s18 = scalar_lea.vmem %s20_s10, 256  ;;  %p128_p4 = scmp.lt.s32.totalorder %s20_s10, %s20_s10 }
   0xa   :  { %p124_p3 = scmp.ne.s32.totalorder %s20_s10, %s123_s18  ;;  %p129_p5 = scmp.lt.s32.totalorder %s123_s18, %s123_s18 }
   0xc   :  { %p130_p6 = por %p129_p5, %p128_p4 }
   0xe   :  { %p131_p7 = pnand %p130_p6, %p124_p3 }
  0x10   :  { %134 = shalt.err (!%p131_p7)
}
  0x11   :  { %s174_s19 = smov 128   ;;  %s175_s20 = smov 8  }
  0x12   :  { %25 = dma.hbm_to_vmem [thread:$0]  %s229_s0, 256, %s20_s10, [#allocation4], %s174_s19, %s174_s19, %s175_s20  }
  0x13   :  { %s176_s23 = smov [#allocation6]   ;;  %s135_s27 = scalar_lea.hbm %s230_s1, 256 }
  0x14   :  { %s35_s24 = sshll.u32 %s176_s23, 4  ;;  %p136_p8 = scmp.ne.s32.totalorder %s230_s1, %s135_s27  ;;  %s36_s24 = int_to_ptr.vmem [resolvable:$true] %s35_s24 }
  0x15   :  { %p139_p9 = scmp.lt.u32.totalorder %s135_s27, %s230_s1 }
  0x17   :  { %p141_p10 = pnand %p139_p9, %p136_p8 }
  0x19   :  { %144 = shalt.err (!%p141_p10)
}
  0x1a   :  { %s145_s4 = scalar_lea.vmem %s36_s24, 256  ;;  %p150_p12 = scmp.lt.s32.totalorder %s36_s24, %s36_s24 }
  0x1b   :  { %p146_p11 = scmp.ne.s32.totalorder %s36_s24, %s145_s4  ;;  %p151_p13 = scmp.lt.s32.totalorder %s145_s4, %s145_s4 }
  0x1d   :  { %p152_p0 = por %p151_p13, %p150_p12 }
  0x1f   :  { %p153_p1 = pnand %p152_p0, %p146_p11 }
  0x21   :  { %156 = shalt.err (!%p153_p1)
}
  0x22   :  { %41 = dma.hbm_to_vmem [thread:$0]  %s230_s1, 256, %s36_s24, [#allocation7], %s174_s19, %s174_s19, %s175_s20  }
  0x23   :  { %167 = dma.done.wait [#allocation4], 256  }
  0x24   :  { %168 = vsyncadd [#allocation4], 4294967040 }
  0x25   :  { %169 = dma.done.wait [#allocation7], 256  }
  0x26   :  { %170 = vsyncadd [#allocation7], 4294967040  ;;  %v58_v0 = vld [vmem:[#allocation3] sm:$0xff]  ;;  %v59_v1 = vld [vmem:[#allocation3 + $0x8] sm:$0xff]  ;;  %s157_s8 = scalar_lea.hbm %s231_s2, 16 }
  0x27   :  { %v60_v2 = vld [vmem:[#allocation6] sm:$0xff]  ;;  %v61_v3 = vld [vmem:[#allocation6 + $0x8] sm:$0xff]  ;;  %p158_p2 = scmp.ne.s32.totalorder %s231_s2, %s157_s8  ;;  %p161_p3 = scmp.lt.u32.totalorder %s157_s8, %s231_s2 }
  0x28   :  { %v62_v4 = vsub.f32 %v58_v0, %v60_v2  ;;  %v63_v5 = vsub.f32 %v59_v1, %v61_v3 }
  0x29   :  { %p163_p4 = pnand %p161_p3, %p158_p2 }
  0x2a   :  { %v64_v6 = vmul.f32 %v62_v4, %v62_v4  ;;  %v65_v7 = vmul.f32 %v63_v5, %v63_v5 }
  0x2c   :  { %v79_v8 = vadd.f32 %v65_v7, %v64_v6 }
  0x2e   :  { %80 = vadd.xlane.f32.xlu0 %v79_v8 }
  0xbb   :  { %v81_v9 = vpop.xlane.xlu0 %80 }
  0xbc   :  { %v82_v10 = vrot.slane %v81_v9, 4 }
  0xbe   :  { %v83_v11 = vadd.f32 %v82_v10, %v81_v9 }
  0xc0   :  { %v84_v12 = vrot.slane %v83_v11, 2 }
  0xc2   :  { %v85_v13 = vadd.f32 %v84_v12, %v83_v11 }
  0xc4   :  { %v86_v14 = vrot.slane %v85_v13, 1 }
  0xc6   :  { %v87_v15 = vadd.f32 %v86_v14, %v85_v13 }
  0xc8   :  { %106 = vpush %v87_v15 }
  0xf9   :  { %s107_s1 = spop %106 }
  0xfa   :  { %90 = sst [smem:[#allocation8]] %s107_s1 }
  0xfb   :  { %166 = shalt.err (!%p163_p4)
}
  0xfc   :  { %s177_s13 = smov [#allocation8]  }
  0xfd   :  { %98 = dma.smem_to_hbm %s177_s13, 16, %s231_s2, [#allocation5]  }
  0xfe   :  { %171 = dma.done.wait [#allocation5], 16  }
  0xff   :  { %172 = vsyncadd [#allocation5], 4294967280 }
 0x100   :  { %102 = sfence }
 0x101   :  { %103 = vsyncpa [#allocation4], 1 }
 0x102   :  { %104 = vsyncpa [#allocation7], 1 }
 0x103   :  { %105 = vsyncpa [#allocation5], 1 }

</bundles_post_ra>
